<compile_context>
chip_gen: v6e
topology: v6e:2x2x1
jax: 0.10.0
libtpu: 0.0.40
codegen_flags: <defaults>
</compile_context>

<pallas_src>
import jax
import jax.numpy as jnp
from jax import lax
from jax.experimental import pallas as pl
from jax.experimental.pallas import tpu as pltpu


def _round_up(n, m):
    return ((n + m - 1) // m) * m


def _round_down(n, m):
    return (n // m) * m


def _chunk_cols(g):
    # Column-chunk size so the live f32 dot result (g, chunk) stays <= ~16 KiB
    # (a handful of vregs), keeping the kernel DMA-bound even at huge tiles.
    return max(128, ((4096 // g) // 128) * 128)


def _vmem_capacity_bytes():
    try:
        return int(pltpu.get_tpu_info().vmem_capacity_bytes)
    except Exception:
        return 64 * 1024 * 1024  # conservative (v7x per-TC) fallback


def lr_kernel(x_ref, w_ref, b_ref, o_ref):
    # x_ref: (TB, W) VMEM   -- W = g*F; each row packs g samples lane-dense.
    # w_ref: (g, W)  VMEM   -- block-diagonal packed weight rows (grid-resident).
    # b_ref: (1,)    SMEM   -- bias scalar.
    # o_ref: (g, TB) VMEM   -- lane-dense output; column r holds the g samples
    #                          packed into x row r.
    tb, _ = x_ref.shape
    g = w_ref.shape[0]
    ch = min(tb, _chunk_cols(g))          # static chunk of output columns
    w = w_ref[...]
    b = b_ref[0]

    def do_chunk(start, size):
        xs = x_ref[pl.ds(start, size), :]
        # "NT" contraction (contract last dims of both operands), like q @ k^T:
        # (g, W) x (size, W) -> (g, size), f32 accumulate on the MXU.
        s = lax.dot_general(
            w, xs,
            dimension_numbers=(((1,), (1,)), ((), ())),
            preferred_element_type=jnp.float32,
        )
        z = s + b
        # sigmoid: exp runs on the EUP slot (free in a mem-bound kernel).
        o_ref[:, pl.ds(start, size)] = (1.0 / (1.0 + jnp.exp(-z))).astype(o_ref.dtype)

    n_full = tb // ch
    rem = tb - n_full * ch

    if n_full == 1:
        do_chunk(0, ch)
    elif n_full > 1:
        def body(c, carry):
            do_chunk(pl.multiple_of(c * ch, ch), ch)
            return carry
        lax.fori_loop(0, n_full, body, 0, unroll=min(n_full, 8))
    if rem > 0:                            # only in the single-full-block case
        do_chunk(n_full * ch, rem)


def lr_forward(x, w, b, *, target_step_bytes=4 * 1024 * 1024):
    """sigmoid(x @ w + b) via a Pallas TPU kernel.

    x: [B, F], w: [F, 1], b: [1, 1] / [1] / scalar  ->  [B, 1] float32.
    """
    B, F = x.shape
    itemsize = jnp.dtype(x.dtype).itemsize

    # --- small-F packing: g samples per 128-lane row --------------------------
    g = 1
    if F <= 64 and 128 % F == 0 and B % (128 // F) == 0:
        g = 128 // F
    W = g * F

    w_flat = jnp.asarray(w, dtype=jnp.float32).reshape(F)
    if g > 1:
        # Block-diagonal (g, g*F): row j holds w in columns j*F:(j+1)*F.
        w_packed = (jnp.eye(g, dtype=jnp.float32)[:, :, None]
                    * w_flat[None, None, :]).reshape(g, W)
    else:
        w_packed = w_flat.reshape(1, F)
    w_packed = w_packed.astype(x.dtype)
    b_smem = jnp.asarray(b, dtype=jnp.float32).reshape(-1)[:1]

    xp = x.reshape(B // g, W) if g > 1 else x     # free row-major view
    Bp = xp.shape[0]

    # --- tile selection: size each grid step by HBM bytes, cap by VMEM -------
    ch = _chunk_cols(g)
    row_hbm = W * itemsize
    row_vmem = _round_up(W, 128) * itemsize
    tile_rows = max(ch, _round_down(target_step_bytes // row_hbm, ch))

    vmem_cap = _vmem_capacity_bytes()
    x_budget = vmem_cap // 3              # double-buffered x tile budget
    cap_rows = max(ch, _round_down(x_budget // (2 * row_vmem), ch))
    tile_rows = min(tile_rows, cap_rows)

    if Bp <= tile_rows:
        tile_rows = Bp                    # single full-array block, grid = 1
    grid = (pl.cdiv(Bp, tile_rows),)      # ragged tail -> Pallas partial block

    need = (2 * tile_rows * row_vmem              # x double buffer
            + 2 * 8 * max(tile_rows, 128) * 4     # out double buffer (sublane pad)
            + (8 << 20))                          # weights / bias / scratch slack
    vmem_limit = int(min(max(need, 32 << 20), (vmem_cap * 9) // 10))

    cost = pl.CostEstimate(
        flops=2 * B * F,
        transcendentals=B,
        bytes_accessed=B * F * itemsize + g * W * itemsize + g * Bp * 4,
    )

    out = pl.pallas_call(
        lr_kernel,
        out_shape=jax.ShapeDtypeStruct((g, Bp), jnp.float32),
        grid_spec=pltpu.PrefetchScalarGridSpec(
            num_scalar_prefetch=0,
            grid=grid,
            in_specs=[
                pl.BlockSpec((tile_rows, W), lambda i: (i, 0)),        # x tile
                pl.BlockSpec((g, W), lambda i: (0, 0)),                # packed weights
                pl.BlockSpec(memory_space=pltpu.MemorySpace.SMEM),     # bias scalar
            ],
            out_specs=pl.BlockSpec((g, tile_rows), lambda i: (0, i)),  # lane-dense
        ),
        compiler_params=pltpu.CompilerParams(
            dimension_semantics=("parallel",),
            vmem_limit_bytes=vmem_limit,
        ),
        cost_estimate=cost,
    )(xp, w_packed, b_smem)

    # Layout plumbing only: sample i lives at out[i % g, i // g].
    return out.T.reshape(Bp * g)[:B].reshape(B, 1)


if __name__ == "__main__":
    key = jax.random.PRNGKey(0)
    kx, kw, kb = jax.random.split(key, 3)
    b = jax.random.normal(kb, (1, 1), dtype=jnp.float32) * 0.1

    def check(B, F, **kwargs):
        kxx, kww = jax.random.split(jax.random.fold_in(kx, B), 2)
        x = jax.random.normal(kxx, (B, F), dtype=jnp.float32)
        w = jax.random.normal(kww, (F, 1), dtype=jnp.float32) * 0.1
        pred = jax.block_until_ready(lr_forward(x, w, b, **kwargs))
        # Precision-agnostic f32 reference (elementwise mul + sum, no matmul).
        logits = jnp.sum(x * w.reshape(1, F), axis=1, keepdims=True) + b[0, 0]
        ref = jax.nn.sigmoid(logits)
        assert pred.shape == (B, 1)
        # Tolerance covers the MXU's bf16-pass f32 matmul at default precision.
        assert jnp.allclose(pred, ref, atol=3e-3, rtol=0.0), (B, F)

    # Small packed case: F=32 -> 4 samples per 128-lane row, single block.
    check(8, 32)
    # Ragged batch (not a multiple of g): falls back to the unpacked path.
    check(5, 32)
    # Multi-step grid with a partial (masked) last block, tiny forced step size.
    check(4100, 32, target_step_bytes=512 * 1024)

    print("KERNEL_OK")
</pallas_src>

<mosaic_0001>
module attributes {stable_mosaic.version = 11 : i64} {
  func.func @lr_kernel(%arg0: i32, %arg1: memref<2x128xf32, #tpu.memory_space<vmem>>, %arg2: memref<4x128xf32, #tpu.memory_space<vmem>>, %arg3: memref<1xf32, #tpu.memory_space<smem>>, %arg4: memref<4x2xf32, #tpu.memory_space<vmem>>) attributes {dimension_semantics = [#tpu.dimension_semantics<parallel>], iteration_bounds = array<i64: 1>, scalar_prefetch = 0 : i64, scratch_operands = 0 : i64, tpu.core_type = #tpu.core_type<tc>, window_params = [{transform_indices = @transform_0, window_bounds = array<i64: 2, 128>}, {pipeline_mode = #tpu.pipeline_mode<synchronous>, transform_indices = @transform_1, window_bounds = array<i64: 4, 128>}, {transform_indices = @transform_2, window_bounds = array<i64: 1>}, {transform_indices = @transform_3, window_bounds = array<i64: 4, 2>}]} {
    %c0 = arith.constant 0 : index
    %c0_0 = arith.constant 0 : index
    %0 = vector.load %arg2[%c0, %c0_0] : memref<4x128xf32, #tpu.memory_space<vmem>>, vector<4x128xf32>
    %c0_1 = arith.constant 0 : index
    %1 = memref.load %arg3[%c0_1] : memref<1xf32, #tpu.memory_space<smem>>
    %c0_2 = arith.constant 0 : index
    %c0_3 = arith.constant 0 : index
    %2 = vector.load %arg1[%c0_2, %c0_3] : memref<2x128xf32, #tpu.memory_space<vmem>>, vector<2x128xf32>
    %cst = arith.constant dense<0.000000e+00> : vector<4x2xf32>
    %3 = tpu.matmul %0, %2, %cst {dimension_numbers = #tpu.dot_dimension_numbers<[1], [1], [0], [0], [0, 0, 1, 0], [], []>} : vector<4x128xf32>, vector<2x128xf32>, vector<4x2xf32> -> vector<4x2xf32>
    %4 = vector.broadcast %1 : f32 to vector<4x2xf32>
    %5 = arith.addf %3, %4 : vector<4x2xf32>
    %cst_4 = arith.constant 0.000000e+00 : f32
    %6 = vector.broadcast %cst_4 : f32 to vector<4x2xf32>
    %7 = arith.subf %6, %5 : vector<4x2xf32>
    %8 = math.exp %7 : vector<4x2xf32>
    %cst_5 = arith.constant 1.000000e+00 : f32
    %9 = vector.broadcast %cst_5 : f32 to vector<4x2xf32>
    %10 = arith.addf %9, %8 : vector<4x2xf32>
    %cst_6 = arith.constant 1.000000e+00 : f32
    %11 = vector.broadcast %cst_6 : f32 to vector<4x2xf32>
    %12 = arith.divf %11, %10 : vector<4x2xf32>
    %c0_7 = arith.constant 0 : index
    %c0_8 = arith.constant 0 : index
    %13 = vector.load %arg4[%c0_7, %c0_8] : memref<4x2xf32, #tpu.memory_space<vmem>>, vector<4x2xf32>
    tpu.vector_store %arg4[%c0_7, %c0_8], %12 {strides = array<i32>} : memref<4x2xf32, #tpu.memory_space<vmem>>, vector<4x2xf32>,
    return
  }
  func.func @transform_0(%arg0: i32) -> (i32, i32) {
    %c0_i32 = arith.constant 0 : i32
    %c0_i32_0 = arith.constant 0 : i32
    return %arg0, %c0_i32 : i32, i32
  }
  func.func @transform_1(%arg0: i32) -> (i32, i32) {
    %c0_i32 = arith.constant 0 : i32
    %c0_i32_0 = arith.constant 0 : i32
    %c0_i32_1 = arith.constant 0 : i32
    return %c0_i32, %c0_i32_0 : i32, i32
  }
  func.func @transform_2(%arg0: i32) -> i32 {
    %c0_i32 = arith.constant 0 : i32
    %c0_i32_0 = arith.constant 0 : i32
    return %c0_i32 : i32
  }
  func.func @transform_3(%arg0: i32) -> (i32, i32) {
    %c0_i32 = arith.constant 0 : i32
    %c0_i32_0 = arith.constant 0 : i32
    return %c0_i32, %arg0 : i32, i32
  }
}

</mosaic_0001>

<bundles_post_ra>
// kernel: tpu_custom_call.1
= control target key start
LH: loop header
LB: loop body
LE: loop exit
PB: predicated region body
PF: predicated region fallthrough
CT: control target
= control target key end

     0   :  { %9 = vsyncpa [#allocation4], 0  ;;  %s150_s12 = smov [#allocation3]   ;;  %s185_s0 = inlined_call_operand.vmem [shape: f32[2,128], index: 0, kind: input, shape index: {}]   ;;  %s186_s1 = inlined_call_operand.hbm [shape: f32[4,128], index: 1, kind: input, shape index: {}]   ;;  %s187_s2 = inlined_call_operand.<no memory space> [shape: f32[1], index: 2, kind: input, shape index: {}]   ;;  %s188_s3 = inlined_call_operand.vmem [shape: f32[4,2], index: 3, kind: output, shape index: {}]  }
   0x1   :  { %s18_s13 = sshll.u32 %s150_s12, 4  ;;  %s19_s13 = int_to_ptr.vmem [resolvable:$true] %s18_s13 }
   0x2   :  { %s136_s14 = scalar_lea.vmem %s19_s13, 64  ;;  %p141_p1 = scmp.lt.s32.totalorder %s19_s13, %s19_s13 }
   0x3   :  { %p137_p0 = scmp.ne.s32.totalorder %s19_s13, %s136_s14  ;;  %p142_p2 = scmp.lt.s32.totalorder %s136_s14, %s136_s14 }
   0x5   :  { %p143_p3 = por %p142_p2, %p141_p1 }
   0x7   :  { %p144_p4 = pnand %p143_p3, %p137_p0 }
   0x9   :  { %147 = shalt.err (!%p144_p4)
}
   0xa   :  { %21 = dma.hbm_to_vmem [thread:$0]  %s186_s1, 64, %s19_s13, [#allocation4]  }
   0xb   :  { %148 = dma.done.wait [#allocation4], 64  }
   0xc   :  { %149 = vsyncadd [#allocation4], 4294967232  ;;  %v151_v0 = vmov 0.0   ;;  %vm152_vm0 = vmmov 0   ;;  %v29_v1 = vld [vmem:[%s185_s0] sm:$0x3]  ;;  %v30_v3 = vstv %s187_s2 }
   0xd   :  { %116 = vmatprep.subr.mxu0 %v151_v0  ;;  %118 = vmatprep.mubr.msk.f32.mxu0 %vm152_vm0, %v151_v0  ;;  %v27_v2 = vld [vmem:[#allocation3] sm:$0xf]  ;;  %vm107_vm1 = vcmask 11264  }
   0xe   :  { %117 = vmatpush3.xpose.msra.mxu0 %v29_v1 }
  0x11   :  { %119 = vmatmul.mubr.f32.vlgmr.msra.gmra.mxu0 %v27_v2 }
  0xd1   :  { %v97_v4 = vpop.f32.mrf.mxu0 }
  0xd2   :  { %v98_v5 = vadd.f32 %v97_v4, %v30_v3 }
  0xd3   :  { %v120_v6 = vpop.f32.mrf.mxu0 }
  0xd4   :  { %v101_v7 = vsub.f32 0.0, %v98_v5 }
  0xd6   :  { %v102_v8 = vmul.f32 1.442695, %v101_v7 }
  0xd8   :  { %124 = vpow2.f32 %v102_v8 }
  0xe5   :  { %v125_v9 = vpop.eup %124 }
  0xe6   :  { %v104_v10 = vadd.f32 1.0, %v125_v9 }
  0xe8   :  { %126 = vrcp.f32 %v104_v10 }
  0xf5   :  { %v127_v11 = vpop.eup %126 }
  0xf6   :  { %108 = vst.msk [vmem:[%s188_s3] sm:$0xf] %vm107_vm1, %v127_v11 }
  0xf7   :  { %113 = vsyncpa [#allocation4], 1 }

</bundles_post_ra>
